<compile_context>
chip_gen: v5e
topology: v5e:2x2
jax: 0.10.0
libtpu: 0.0.40
codegen_flags: <defaults>
</compile_context>

<pallas_src>
import functools

import numpy as np
import jax
import jax.numpy as jnp
from jax.experimental import pallas as pl
from jax.experimental.pallas import tpu as pltpu


def _round_up(x, m):
    return ((x + m - 1) // m) * m


# ----------------------------------------------------------------------------
# Pallas kernels: matmul with fused per-column affine (folded BN/bias) + ReLU
# ----------------------------------------------------------------------------
def _mm_fused_single_k_kernel(a_ref, b_ref, s_ref, c_ref, o_ref):
    """o = relu((a @ b) * s + c); whole K reduction in one step (no scratch)."""
    acc = jnp.dot(a_ref[...], b_ref[...], preferred_element_type=jnp.float32)
    y = acc * s_ref[...] + c_ref[...]
    o_ref[...] = jnp.maximum(y, 0.0).astype(o_ref.dtype)


def _mm_fused_multi_k_kernel(a_ref, b_ref, s_ref, c_ref, o_ref, acc_ref):
    """Same, with K tiled over grid axis 2 and an f32 VMEM accumulator."""
    @pl.when(pl.program_id(2) == 0)
    def _():
        acc_ref[...] = jnp.zeros_like(acc_ref)

    acc_ref[...] += jnp.dot(a_ref[...], b_ref[...],
                            preferred_element_type=jnp.float32)

    @pl.when(pl.program_id(2) == pl.num_programs(2) - 1)
    def _():
        y = acc_ref[...] * s_ref[...] + c_ref[...]
        o_ref[...] = jnp.maximum(y, 0.0).astype(o_ref.dtype)


def fused_matmul_bn_relu(a, b, scale, shift, *, tm=256, tn=256, tk=512,
                         single_k_max=2048):
    """relu((a @ b) * scale + shift).

    a: (M, K), b: (K, N) are cast to bf16 (MXU-native); accumulation and the
    per-column affine epilogue stay in f32.  scale/shift broadcast over rows.
    """
    M, K = a.shape
    K2, N = b.shape
    assert K == K2

    # Tile sizes adapt to small problems; always 128-aligned for clean layout.
    tm = min(tm, _round_up(M, 128))
    tn = min(tn, _round_up(N, 128))
    Mp = _round_up(M, tm)
    Np = _round_up(N, tn)

    Kp_full = _round_up(K, 128)
    single_k = Kp_full <= single_k_max
    Kp = Kp_full if single_k else _round_up(K, tk)

    a_p = jnp.pad(a.astype(jnp.bfloat16), ((0, Mp - M), (0, Kp - K)))
    b_p = jnp.pad(b.astype(jnp.bfloat16), ((0, Kp - K), (0, Np - N)))
    s_p = jnp.pad(scale.astype(jnp.float32).reshape(1, N), ((0, 0), (0, Np - N)))
    c_p = jnp.pad(shift.astype(jnp.float32).reshape(1, N), ((0, 0), (0, Np - N)))

    if single_k:
        out = pl.pallas_call(
            _mm_fused_single_k_kernel,
            out_shape=jax.ShapeDtypeStruct((Mp, Np), jnp.float32),
            grid_spec=pltpu.PrefetchScalarGridSpec(
                num_scalar_prefetch=0,
                grid=(Mp // tm, Np // tn),
                in_specs=[
                    pl.BlockSpec((tm, Kp), lambda i, j: (i, 0)),
                    pl.BlockSpec((Kp, tn), lambda i, j: (0, j)),
                    pl.BlockSpec((1, tn), lambda i, j: (0, j)),
                    pl.BlockSpec((1, tn), lambda i, j: (0, j)),
                ],
                out_specs=pl.BlockSpec((tm, tn), lambda i, j: (i, j)),
            ),
            compiler_params=pltpu.CompilerParams(
                dimension_semantics=("parallel", "parallel"),
                vmem_limit_bytes=32 * 1024 * 1024),
        )(a_p, b_p, s_p, c_p)
    else:
        out = pl.pallas_call(
            _mm_fused_multi_k_kernel,
            out_shape=jax.ShapeDtypeStruct((Mp, Np), jnp.float32),
            grid_spec=pltpu.PrefetchScalarGridSpec(
                num_scalar_prefetch=0,
                grid=(Mp // tm, Np // tn, Kp // tk),
                in_specs=[
                    pl.BlockSpec((tm, tk), lambda i, j, k: (i, k)),
                    pl.BlockSpec((tk, tn), lambda i, j, k: (k, j)),
                    pl.BlockSpec((1, tn), lambda i, j, k: (0, j)),
                    pl.BlockSpec((1, tn), lambda i, j, k: (0, j)),
                ],
                out_specs=pl.BlockSpec((tm, tn), lambda i, j, k: (i, j)),
                scratch_shapes=[pltpu.VMEM((tm, tn), jnp.float32)],
            ),
            compiler_params=pltpu.CompilerParams(
                dimension_semantics=("parallel", "parallel", "arbitrary"),
                vmem_limit_bytes=32 * 1024 * 1024),
        )(a_p, b_p, s_p, c_p)
    return out[:M, :N]


# ----------------------------------------------------------------------------
# JAX glue: bf16 im2col for the strided 3x3 conv
# ----------------------------------------------------------------------------
def _im2col(x, k, stride, pad):
    """x: (B,H,W,C) bf16 -> (B*Ho*Wo, k*k*C) bf16, row ordering (kh, kw, cin)."""
    B, H, W, C = x.shape
    xp = jnp.pad(x, ((0, 0), (pad, pad), (pad, pad), (0, 0)))
    Ho = (H + 2 * pad - k) // stride + 1
    Wo = (W + 2 * pad - k) // stride + 1
    cols = []
    for kh in range(k):
        for kw in range(k):
            cols.append(xp[:, kh:kh + stride * (Ho - 1) + 1:stride,
                           kw:kw + stride * (Wo - 1) + 1:stride, :])
    p = jnp.stack(cols, axis=3)                      # (B, Ho, Wo, k*k, C)
    return p.reshape(B * Ho * Wo, k * k * C), Ho, Wo


# ----------------------------------------------------------------------------
# Down block forward: Conv2d(3x3, s=2, p=1, bias) -> BatchNorm2d(eval) -> ReLU
# ----------------------------------------------------------------------------
def down_forward(x_nchw, params):
    x = jnp.transpose(x_nchw, (0, 2, 3, 1)).astype(jnp.float32)   # NCHW -> NHWC
    w = params["w"]                                               # (Cout, Cin, 3, 3)
    bias = params.get("bias", None)
    bn = params["bn"]
    Cout, Cin, kh, kw = w.shape
    B = x.shape[0]

    # bf16 operands (f32 accumulation happens inside the kernel)
    patches, Ho, Wo = _im2col(x.astype(jnp.bfloat16), kh, 2, 1)
    wm = jnp.transpose(w, (2, 3, 1, 0)).reshape(kh * kw * Cin, Cout)
    wm = wm.astype(jnp.bfloat16)

    # Fold eval-mode BatchNorm (+ conv bias) into a per-channel affine.
    scale = bn["gamma"] * jax.lax.rsqrt(bn["var"] + 1e-5)
    shift = bn["beta"] - bn["mean"] * scale
    if bias is not None:
        shift = shift + bias * scale

    y = fused_matmul_bn_relu(patches, wm, scale, shift)           # (B*Ho*Wo, Cout) f32
    y = y.reshape(B, Ho, Wo, Cout)
    return jnp.transpose(y, (0, 3, 1, 2))                         # NHWC -> NCHW


# ----------------------------------------------------------------------------
# Pure-JAX reference (same bf16-quantized operands) for a correctness check
# ----------------------------------------------------------------------------
def _reference_down(x_nchw, params):
    xb = x_nchw.astype(jnp.bfloat16).astype(jnp.float32)
    wb = params["w"].astype(jnp.bfloat16).astype(jnp.float32)
    y = jax.lax.conv_general_dilated(
        xb, wb, window_strides=(2, 2), padding=((1, 1), (1, 1)),
        dimension_numbers=("NCHW", "OIHW", "NCHW"),
        precision=jax.lax.Precision.HIGHEST)
    bn = params["bn"]
    scale = bn["gamma"] * jax.lax.rsqrt(bn["var"] + 1e-5)
    shift = bn["beta"] - bn["mean"] * scale
    if params.get("bias", None) is not None:
        shift = shift + params["bias"] * scale
    y = y * scale[None, :, None, None] + shift[None, :, None, None]
    return jnp.maximum(y, 0.0)


# ----------------------------------------------------------------------------
if __name__ == "__main__":
    B, CIN, COUT, H, W = 2, 4, 16, 16, 16

    key = jax.random.PRNGKey(0)
    k_w, k_b, k_g, k_be, k_m, k_v, k_x = jax.random.split(key, 7)

    params = {
        "w": jax.random.normal(k_w, (COUT, CIN, 3, 3), jnp.float32)
             / np.sqrt(CIN * 9),
        "bias": 0.05 * jax.random.normal(k_b, (COUT,), jnp.float32),  # use_bias=True
        "bn": {
            "gamma": 1.0 + 0.1 * jax.random.normal(k_g, (COUT,), jnp.float32),
            "beta": 0.1 * jax.random.normal(k_be, (COUT,), jnp.float32),
            "mean": 0.1 * jax.random.normal(k_m, (COUT,), jnp.float32),
            "var": 1.0 + 0.1 * jnp.abs(
                jax.random.normal(k_v, (COUT,), jnp.float32)),
        },
    }
    x = jax.random.normal(k_x, (B, CIN, H, W), jnp.float32)

    out = jax.jit(down_forward)(x, params)
    out = jax.block_until_ready(out)

    assert out.shape == (B, COUT, H // 2, W // 2), out.shape
    assert bool(jnp.all(jnp.isfinite(out)))

    ref = _reference_down(x, params)
    err = float(jnp.max(jnp.abs(out - ref)))
    assert err < 2e-3, f"max abs err vs reference: {err}"

    print("KERNEL_OK")
</pallas_src>

<mosaic_0001>
module attributes {stable_mosaic.version = 11 : i64} {
  func.func @_mm_fused_single_k_kernel(%arg0: i32, %arg1: i32, %arg2: memref<128x128xbf16, #tpu.memory_space<vmem>>, %arg3: memref<128x128xbf16, #tpu.memory_space<vmem>>, %arg4: memref<1x128xf32, #tpu.memory_space<vmem>>, %arg5: memref<1x128xf32, #tpu.memory_space<vmem>>, %arg6: memref<128x128xf32, #tpu.memory_space<vmem>>) attributes {dimension_semantics = [#tpu.dimension_semantics<parallel>, #tpu.dimension_semantics<parallel>], iteration_bounds = array<i64: 1, 1>, scalar_prefetch = 0 : i64, scratch_operands = 0 : i64, tpu.core_type = #tpu.core_type<tc>, window_params = [{transform_indices = @transform_0, window_bounds = array<i64: 128, 128>}, {transform_indices = @transform_1, window_bounds = array<i64: 128, 128>}, {transform_indices = @transform_2, window_bounds = array<i64: 1, 128>}, {transform_indices = @transform_3, window_bounds = array<i64: 1, 128>}, {transform_indices = @transform_4, window_bounds = array<i64: 128, 128>}]} {
    %c0 = arith.constant 0 : index
    %c0_0 = arith.constant 0 : index
    %0 = vector.load %arg2[%c0, %c0_0] : memref<128x128xbf16, #tpu.memory_space<vmem>>, vector<128x128xbf16>
    %c0_1 = arith.constant 0 : index
    %c0_2 = arith.constant 0 : index
    %1 = vector.load %arg3[%c0_1, %c0_2] : memref<128x128xbf16, #tpu.memory_space<vmem>>, vector<128x128xbf16>
    %cst = arith.constant dense<0.000000e+00> : vector<128x128xf32>
    %2 = tpu.matmul %0, %1, %cst {dimension_numbers = #tpu.dot_dimension_numbers<[1], [0], [0], [1], [0, 0, 1, 1], [], []>} : vector<128x128xbf16>, vector<128x128xbf16>, vector<128x128xf32> -> vector<128x128xf32>
    %c0_3 = arith.constant 0 : index
    %c0_4 = arith.constant 0 : index
    %3 = vector.load %arg4[%c0_3, %c0_4] : memref<1x128xf32, #tpu.memory_space<vmem>>, vector<1x128xf32>
    %4 = vector.broadcast %3 : vector<1x128xf32> to vector<128x128xf32>
    %5 = arith.mulf %2, %4 : vector<128x128xf32>
    %c0_5 = arith.constant 0 : index
    %c0_6 = arith.constant 0 : index
    %6 = vector.load %arg5[%c0_5, %c0_6] : memref<1x128xf32, #tpu.memory_space<vmem>>, vector<1x128xf32>
    %7 = vector.broadcast %6 : vector<1x128xf32> to vector<128x128xf32>
    %8 = arith.addf %5, %7 : vector<128x128xf32>
    %cst_7 = arith.constant 0.000000e+00 : f32
    %9 = vector.broadcast %cst_7 : f32 to vector<128x128xf32>
    %10 = arith.maximumf %8, %9 : vector<128x128xf32>
    %c0_8 = arith.constant 0 : index
    %c0_9 = arith.constant 0 : index
    %11 = vector.load %arg6[%c0_8, %c0_9] : memref<128x128xf32, #tpu.memory_space<vmem>>, vector<128x128xf32>
    tpu.vector_store %arg6[%c0_8, %c0_9], %10 {strides = array<i32>} : memref<128x128xf32, #tpu.memory_space<vmem>>, vector<128x128xf32>,
    return
  }
  func.func @transform_0(%arg0: i32, %arg1: i32) -> (i32, i32) {
    %c0_i32 = arith.constant 0 : i32
    %c0_i32_0 = arith.constant 0 : i32
    return %arg0, %c0_i32 : i32, i32
  }
  func.func @transform_1(%arg0: i32, %arg1: i32) -> (i32, i32) {
    %c0_i32 = arith.constant 0 : i32
    %c0_i32_0 = arith.constant 0 : i32
    return %c0_i32, %arg1 : i32, i32
  }
  func.func @transform_2(%arg0: i32, %arg1: i32) -> (i32, i32) {
    %c0_i32 = arith.constant 0 : i32
    %c0_i32_0 = arith.constant 0 : i32
    return %c0_i32, %arg1 : i32, i32
  }
  func.func @transform_3(%arg0: i32, %arg1: i32) -> (i32, i32) {
    %c0_i32 = arith.constant 0 : i32
    %c0_i32_0 = arith.constant 0 : i32
    return %c0_i32, %arg1 : i32, i32
  }
  func.func @transform_4(%arg0: i32, %arg1: i32) -> (i32, i32) {
    %c0_i32 = arith.constant 0 : i32
    return %arg0, %arg1 : i32, i32
  }
}

</mosaic_0001>

<bundles_post_ra>
// kernel: down_forward.1
= control target key start
LH: loop header
LB: loop body
LE: loop exit
PB: predicated region body
PF: predicated region fallthrough
CT: control target
= control target key end

     0   :  { %s541_s0 = inlined_call_operand.vmem [shape: bf16[128,128], index: 0, kind: input, shape index: {}]   ;;  %s542_s1 = inlined_call_operand.vmem [shape: bf16[128,128], index: 1, kind: input, shape index: {}]   ;;  %s543_s2 = inlined_call_operand.vmem [shape: f32[1,128], index: 2, kind: input, shape index: {}]   ;;  %s544_s3 = inlined_call_operand.vmem [shape: f32[1,128], index: 3, kind: input, shape index: {}]   ;;  %s545_s4 = inlined_call_operand.hbm [shape: f32[128,128], index: 4, kind: output, shape index: {}]  }
   0x1   :  { %v364_v0 = vld [vmem:[%s542_s1 + $0x38] sm:$0xff]  ;;  %v363_v1 = vld [vmem:[%s542_s1 + $0x30] sm:$0xff] }
   0x2   :  { %146 = vmatpush.bf16.msra.mxu0 %v364_v0  ;;  %365 = vmatpush.bf16.msra.mxu1 %v364_v0 }
   0x3   :  { %366 = vmatpush.bf16.msra.mxu2 %v364_v0  ;;  %367 = vmatpush.bf16.msra.mxu3 %v364_v0 }
   0x4   :  { %9 = vsyncpa [#allocation3], 0  ;;  %v362_v2 = vld [vmem:[%s542_s1 + $0x28] sm:$0xff]  ;;  %v361_v3 = vld [vmem:[%s542_s1 + $0x20] sm:$0xff]  ;;  %s273_s25 = sshll.u32 %s545_s4, 4  ;;  %s421_s26 = smov 128   ;;  %s274_s25 = int_to_ptr.hbm [resolvable:$true] %s273_s25 }
   0x5   :  { %v360_v4 = vld [vmem:[%s542_s1 + $0x18] sm:$0xff]  ;;  %v359_v5 = vld [vmem:[%s542_s1 + $0x10] sm:$0xff]  ;;  %v358_v6 = vld [vmem:[%s542_s1 + $0x8] sm:$0xff]  ;;  %s422_s27 = smov 8  }
   0x6   :  { %147 = vmatpush.bf16.msra.mxu0 %v363_v1  ;;  %368 = vmatpush.bf16.msra.mxu1 %v363_v1  ;;  %v357_v7 = vld [vmem:[%s542_s1] sm:$0xff]  ;;  %v351_v9 = vld [vmem:[%s541_s0 + $0x10] sm:$0xff]  ;;  %v350_v12 = vld [vmem:[%s541_s0 + $0x8] sm:$0xff] }
   0x7   :  { %369 = vmatpush.bf16.msra.mxu2 %v363_v1  ;;  %370 = vmatpush.bf16.msra.mxu3 %v363_v1  ;;  %v349_v8 = vld [vmem:[%s541_s0] sm:$0xff]  ;;  %v355_v11 = vld [vmem:[%s541_s0 + $0x30] sm:$0xff]  ;;  %v352_v13 = vld [vmem:[%s541_s0 + $0x18] sm:$0xff] }
   0x8   :  { %v353_v10 = vld [vmem:[%s541_s0 + $0x20] sm:$0xff]  ;;  %v354_v14 = vld [vmem:[%s541_s0 + $0x28] sm:$0xff]  ;;  %v356_v15 = vld [vmem:[%s541_s0 + $0x38] sm:$0xff]  ;;  %s420_s0 = smov [#allocation2]  }
   0x9   :  { %v499_v16 = vld [vmem:[%s543_s2] ss:$0 sm:$0xff]  ;;  %s271_s2 = sshll.u32 %s420_s0, 4  ;;  %s272_s2 = int_to_ptr.vmem [resolvable:$true] %s271_s2 }
   0xa   :  { %148 = vmatpush.bf16.msra.mxu0 %v362_v2  ;;  %371 = vmatpush.bf16.msra.mxu1 %v362_v2  ;;  %v504_v17 = vld [vmem:[%s544_s3] ss:$0 sm:$0xff] }
   0xb   :  { %372 = vmatpush.bf16.msra.mxu2 %v362_v2  ;;  %373 = vmatpush.bf16.msra.mxu3 %v362_v2 }
   0xe   :  { %149 = vmatpush.bf16.msra.mxu0 %v361_v3  ;;  %374 = vmatpush.bf16.msra.mxu1 %v361_v3 }
   0xf   :  { %375 = vmatpush.bf16.msra.mxu2 %v361_v3  ;;  %376 = vmatpush.bf16.msra.mxu3 %v361_v3 }
  0x12   :  { %150 = vmatpush.bf16.msra.mxu0 %v360_v4  ;;  %377 = vmatpush.bf16.msra.mxu1 %v360_v4 }
  0x13   :  { %378 = vmatpush.bf16.msra.mxu2 %v360_v4  ;;  %379 = vmatpush.bf16.msra.mxu3 %v360_v4 }
  0x16   :  { %151 = vmatpush.bf16.msra.mxu0 %v359_v5  ;;  %380 = vmatpush.bf16.msra.mxu1 %v359_v5 }
  0x17   :  { %381 = vmatpush.bf16.msra.mxu2 %v359_v5  ;;  %382 = vmatpush.bf16.msra.mxu3 %v359_v5 }
  0x1a   :  { %152 = vmatpush.bf16.msra.mxu0 %v358_v6  ;;  %383 = vmatpush.bf16.msra.mxu1 %v358_v6 }
  0x1b   :  { %384 = vmatpush.bf16.msra.mxu2 %v358_v6  ;;  %385 = vmatpush.bf16.msra.mxu3 %v358_v6 }
  0x1e   :  { %153 = vmatpush.bf16.msra.mxu0 %v357_v7  ;;  %386 = vmatpush.bf16.msra.mxu1 %v357_v7 }
  0x1f   :  { %387 = vmatpush.bf16.msra.mxu2 %v357_v7  ;;  %388 = vmatpush.bf16.msra.mxu3 %v357_v7 }
  0x21   :  { %154 = vmatmul.bf16.vlgmr.msra.gmra.mxu0 %v349_v8  ;;  %164 = vmatmul.bf16.vlgmr.msra.gmra.mxu1 %v351_v9 }
  0x22   :  { %174 = vmatmul.bf16.vlgmr.msra.gmra.mxu2 %v353_v10  ;;  %184 = vmatmul.bf16.vlgmr.msra.gmra.mxu3 %v355_v11 }
  0x31   :  { %159 = vmatmul.bf16.gmra.mxu0 %v350_v12  ;;  %169 = vmatmul.bf16.gmra.mxu1 %v352_v13 }
  0x32   :  { %179 = vmatmul.bf16.gmra.mxu2 %v354_v14  ;;  %189 = vmatmul.bf16.gmra.mxu3 %v356_v15 }
  0x9e   :  { %v155_v18 = vpop.f32.mrf.mxu0  ;;  %v165_v19 = vpop.f32.mrf.mxu1 }
  0x9f   :  { %v199_v20 = vmul.f32 %v499_v16, %v155_v18  ;;  %v203_v21 = vmul.f32 %v499_v16, %v165_v19 }
  0xa1   :  { %v219_v22 = vadd.f32 %v504_v17, %v199_v20  ;;  %v223_v23 = vadd.f32 %v504_v17, %v203_v21 }
  0xa3   :  { %v235_v24 = vmax.f32 %v219_v22, 0.0  ;;  %v239_v25 = vmax.f32 %v223_v23, 0.0 }
  0xa5   :  { %251 = vst [vmem:[#allocation2] sm:$0xff] %v235_v24  ;;  %v175_v26 = vpop.f32.mrf.mxu2  ;;  %v185_v27 = vpop.f32.mrf.mxu3 }
  0xa6   :  { %255 = vst [vmem:[#allocation2 + $0x20] sm:$0xff] %v239_v25  ;;  %v207_v28 = vmul.f32 %v499_v16, %v175_v26  ;;  %v211_v29 = vmul.f32 %v499_v16, %v185_v27  ;;  %v157_v30 = vpop.f32.mrf.mxu0  ;;  %v167_v31 = vpop.f32.mrf.mxu1 }
  0xa7   :  { %v200_v32 = vmul.f32 %v499_v16, %v157_v30  ;;  %v204_v33 = vmul.f32 %v499_v16, %v167_v31 }
  0xa8   :  { %v227_v34 = vadd.f32 %v504_v17, %v207_v28  ;;  %v231_v35 = vadd.f32 %v504_v17, %v211_v29 }
  0xa9   :  { %v220_v36 = vadd.f32 %v504_v17, %v200_v32  ;;  %v224_v37 = vadd.f32 %v504_v17, %v204_v33 }
  0xaa   :  { %v243_v38 = vmax.f32 %v227_v34, 0.0  ;;  %v247_v39 = vmax.f32 %v231_v35, 0.0 }
  0xab   :  { %v236_v40 = vmax.f32 %v220_v36, 0.0  ;;  %v240_v41 = vmax.f32 %v224_v37, 0.0 }
  0xac   :  { %259 = vst [vmem:[#allocation2 + $0x40] sm:$0xff] %v243_v38 }
  0xad   :  { %263 = vst [vmem:[#allocation2 + $0x60] sm:$0xff] %v247_v39  ;;  %v177_v42 = vpop.f32.mrf.mxu2  ;;  %v187_v43 = vpop.f32.mrf.mxu3 }
  0xae   :  { %252 = vst [vmem:[#allocation2 + $0x8] sm:$0xff] %v236_v40  ;;  %v208_v44 = vmul.f32 %v499_v16, %v177_v42  ;;  %v212_v45 = vmul.f32 %v499_v16, %v187_v43  ;;  %v160_v46 = vpop.f32.mrf.mxu0  ;;  %v170_v47 = vpop.f32.mrf.mxu1 }
  0xaf   :  { %256 = vst [vmem:[#allocation2 + $0x28] sm:$0xff] %v240_v41  ;;  %v201_v48 = vmul.f32 %v499_v16, %v160_v46  ;;  %v205_v49 = vmul.f32 %v499_v16, %v170_v47 }
  0xb0   :  { %v228_v50 = vadd.f32 %v504_v17, %v208_v44  ;;  %v232_v51 = vadd.f32 %v504_v17, %v212_v45 }
  0xb1   :  { %v221_v52 = vadd.f32 %v504_v17, %v201_v48  ;;  %v225_v53 = vadd.f32 %v504_v17, %v205_v49 }
  0xb2   :  { %v244_v54 = vmax.f32 %v228_v50, 0.0  ;;  %v248_v55 = vmax.f32 %v232_v51, 0.0 }
  0xb3   :  { %v237_v56 = vmax.f32 %v221_v52, 0.0  ;;  %v241_v57 = vmax.f32 %v225_v53, 0.0 }
  0xb4   :  { %260 = vst [vmem:[#allocation2 + $0x48] sm:$0xff] %v244_v54 }
  0xb5   :  { %264 = vst [vmem:[#allocation2 + $0x68] sm:$0xff] %v248_v55  ;;  %v180_v58 = vpop.f32.mrf.mxu2  ;;  %v190_v59 = vpop.f32.mrf.mxu3 }
  0xb6   :  { %253 = vst [vmem:[#allocation2 + $0x10] sm:$0xff] %v237_v56  ;;  %v209_v60 = vmul.f32 %v499_v16, %v180_v58  ;;  %v213_v61 = vmul.f32 %v499_v16, %v190_v59  ;;  %v162_v62 = vpop.f32.mrf.mxu0  ;;  %v172_v63 = vpop.f32.mrf.mxu1 }
  0xb7   :  { %257 = vst [vmem:[#allocation2 + $0x30] sm:$0xff] %v241_v57  ;;  %v202_v0 = vmul.f32 %v499_v16, %v162_v62  ;;  %v206_v1 = vmul.f32 %v499_v16, %v172_v63 }
  0xb8   :  { %v229_v2 = vadd.f32 %v504_v17, %v209_v60  ;;  %v233_v3 = vadd.f32 %v504_v17, %v213_v61 }
  0xb9   :  { %v222_v4 = vadd.f32 %v504_v17, %v202_v0  ;;  %v226_v5 = vadd.f32 %v504_v17, %v206_v1 }
  0xba   :  { %v245_v6 = vmax.f32 %v229_v2, 0.0  ;;  %v249_v7 = vmax.f32 %v233_v3, 0.0 }
  0xbb   :  { %v238_v8 = vmax.f32 %v222_v4, 0.0  ;;  %v242_v9 = vmax.f32 %v226_v5, 0.0 }
  0xbc   :  { %261 = vst [vmem:[#allocation2 + $0x50] sm:$0xff] %v245_v6 }
  0xbd   :  { %265 = vst [vmem:[#allocation2 + $0x70] sm:$0xff] %v249_v7  ;;  %v182_v10 = vpop.f32.mrf.mxu2  ;;  %v192_v11 = vpop.f32.mrf.mxu3 }
  0xbe   :  { %254 = vst [vmem:[#allocation2 + $0x18] sm:$0xff] %v238_v8  ;;  %v210_v12 = vmul.f32 %v499_v16, %v182_v10  ;;  %v214_v13 = vmul.f32 %v499_v16, %v192_v11 }
  0xbf   :  { %258 = vst [vmem:[#allocation2 + $0x38] sm:$0xff] %v242_v9 }
  0xc0   :  { %v230_v14 = vadd.f32 %v504_v17, %v210_v12  ;;  %v234_v15 = vadd.f32 %v504_v17, %v214_v13 }
  0xc2   :  { %v246_v18 = vmax.f32 %v230_v14, 0.0  ;;  %v250_v19 = vmax.f32 %v234_v15, 0.0 }
  0xc4   :  { %262 = vst [vmem:[#allocation2 + $0x58] sm:$0xff] %v246_v18 }
  0xc5   :  { %266 = vst [vmem:[#allocation2 + $0x78] sm:$0xff] %v250_v19 }
  0xc6   :  { %279 = dma.vmem_to_hbm [thread:$0]  %s272_s2, 2048, %s274_s25, [#allocation3], %s421_s26, %s421_s26, %s422_s27  }
  0xc7   :  { %418 = dma.done.wait [#allocation3], 2048  }
  0xc8   :  { %419 = vsyncadd [#allocation3], 4294965248 }
  0xc9   :  { %284 = vsyncpa [#allocation3], 1 }

</bundles_post_ra>
